<compile_context>
chip_gen: v6e
topology: v6e:2x2x1
jax: 0.10.0
libtpu: 0.0.40
codegen_flags: <defaults>
</compile_context>

<pallas_src>
import functools

import jax
import jax.numpy as jnp
from jax import lax
from jax.experimental import pallas as pl
from jax.experimental.pallas import tpu as pltpu

BN_EPS = 1e-5
LANE = 128


def _round_up(n, m):
    return ((n + m - 1) // m) * m


def _fused_mlp_kernel(a_ref, x_ref, *rest):
    """Fused forward pass for L stacked (Linear -> BN1d -> PReLU) blocks.

    a_ref : (L,)  f32 SMEM      PReLU slopes (one shared slope per layer)
    x_ref : (B, P0) f32 VMEM    zero-padded input activations
    rest  : L triples (w_ref (P_{l-1}, P_l) bf16, gamma_ref (1, P_l) f32,
            beta_ref (1, P_l) f32) followed by o_ref (B, P_L) f32 VMEM.
    """
    o_ref = rest[-1]
    layer_refs = rest[:-1]
    n_layers = len(layer_refs) // 3

    h = x_ref[...]
    for l in range(n_layers):
        w_ref, g_ref, b_ref = layer_refs[3 * l:3 * l + 3]

        # Linear on the MXU: bf16 inputs, f32 accumulation.
        # (No bias: it is cancelled exactly by the BN mean subtraction below.)
        y = jnp.dot(h.astype(jnp.bfloat16), w_ref[...],
                    preferred_element_type=jnp.float32)

        # BatchNorm1d, training mode: batch mean, biased batch variance (f32).
        mean = jnp.mean(y, axis=0, keepdims=True)
        centered = y - mean
        var = jnp.mean(centered * centered, axis=0, keepdims=True)
        y_bn = centered * lax.rsqrt(var + BN_EPS) * g_ref[...] + b_ref[...]

        # PReLU (single shared slope). Dropout(p=0) is the identity.
        slope = a_ref[l]
        h = jnp.where(y_bn > 0, y_bn, slope * y_bn)

    o_ref[...] = h


def fused_mlp(x_pad, slopes, layers):
    """One pallas_call running the whole (small) MLP with everything in VMEM."""
    B = x_pad.shape[0]
    d_out_pad = layers[-1]["w_t"].shape[1]

    operands = [slopes, x_pad]
    in_specs = [
        pl.BlockSpec(memory_space=pltpu.MemorySpace.SMEM),   # PReLU slopes
        pl.BlockSpec(memory_space=pltpu.MemorySpace.VMEM),   # x
    ]
    for p in layers:
        operands += [p["w_t"], p["gamma"], p["beta"]]
        in_specs += [pl.BlockSpec(memory_space=pltpu.MemorySpace.VMEM)] * 3

    return pl.pallas_call(
        _fused_mlp_kernel,
        out_shape=jax.ShapeDtypeStruct((B, d_out_pad), jnp.float32),
        in_specs=in_specs,
        out_specs=pl.BlockSpec(memory_space=pltpu.MemorySpace.VMEM),
    )(*operands)


def init_mlp_params(key, input_dim, dims):
    """Parameters mirroring the PyTorch module (forward-pass relevant subset).

    Weights are stored pre-transposed, zero-padded to 128-lane multiples and
    cast to bf16 (halves weight DMA bytes); gamma/beta stay f32.  The Linear
    bias is omitted because training-mode BN cancels it exactly.
    """
    layers = []
    d_in = input_dim
    for d_out in dims:
        key, kw = jax.random.split(key)
        bound = 1.0 / float(d_in) ** 0.5
        w = jax.random.uniform(kw, (d_out, d_in), jnp.float32, -bound, bound)

        p_in = _round_up(d_in, LANE)
        p_out = _round_up(d_out, LANE)
        w_t = jnp.zeros((p_in, p_out), jnp.float32).at[:d_in, :d_out].set(w.T)

        layers.append(dict(
            w_t=w_t.astype(jnp.bfloat16),          # (p_in, p_out) bf16, zero-padded
            gamma=jnp.ones((1, p_out), jnp.float32),
            beta=jnp.zeros((1, p_out), jnp.float32),
        ))
        d_in = d_out

    slopes = jnp.full((len(dims),), 0.25, jnp.float32)   # PReLU init=0.25
    return slopes, layers


@functools.partial(jax.jit, static_argnames=("out_dim",))
def mlp_forward(x, slopes, layers, *, out_dim):
    p_in = layers[0]["w_t"].shape[0]
    d_in = x.shape[1]
    x_pad = jnp.pad(x.astype(jnp.float32), ((0, 0), (0, p_in - d_in)))
    out_pad = fused_mlp(x_pad, slopes, layers)
    return out_pad[:, :out_dim]


if __name__ == "__main__":
    key = jax.random.PRNGKey(0)
    k_x, k_p = jax.random.split(key)

    batch = 8
    input_dim = 32
    dims = [256, 128, 64]

    x = jax.random.normal(k_x, (batch, input_dim), jnp.float32)
    slopes, layers = init_mlp_params(k_p, input_dim, dims)

    out = mlp_forward(x, slopes, layers, out_dim=dims[-1])
    jax.block_until_ready(out)

    assert out.shape == (batch, dims[-1]), out.shape
    assert out.dtype == jnp.float32
    assert bool(jnp.all(jnp.isfinite(out)))
    print("KERNEL_OK")
</pallas_src>

<mosaic_0001>
module attributes {stable_mosaic.version = 11 : i64} {
  func.func @_fused_mlp_kernel(%arg0: memref<3xf32, #tpu.memory_space<smem>>, %arg1: memref<8x128xf32, #tpu.memory_space<vmem>>, %arg2: memref<128x256xbf16, #tpu.memory_space<vmem>>, %arg3: memref<1x256xf32, #tpu.memory_space<vmem>>, %arg4: memref<1x256xf32, #tpu.memory_space<vmem>>, %arg5: memref<256x128xbf16, #tpu.memory_space<vmem>>, %arg6: memref<1x128xf32, #tpu.memory_space<vmem>>, %arg7: memref<1x128xf32, #tpu.memory_space<vmem>>, %arg8: memref<128x128xbf16, #tpu.memory_space<vmem>>, %arg9: memref<1x128xf32, #tpu.memory_space<vmem>>, %arg10: memref<1x128xf32, #tpu.memory_space<vmem>>, %arg11: memref<8x128xf32, #tpu.memory_space<vmem>>) attributes {dimension_semantics = [], scalar_prefetch = 0 : i64, scratch_operands = 0 : i64, tpu.core_type = #tpu.core_type<tc>} {
    %c0 = arith.constant 0 : index
    %c0_0 = arith.constant 0 : index
    %0 = vector.load %arg1[%c0, %c0_0] : memref<8x128xf32, #tpu.memory_space<vmem>>, vector<8x128xf32>
    %1 = arith.truncf %0 : vector<8x128xf32> to vector<8x128xbf16>
    %c0_1 = arith.constant 0 : index
    %c0_2 = arith.constant 0 : index
    %2 = vector.load %arg2[%c0_1, %c0_2] : memref<128x256xbf16, #tpu.memory_space<vmem>>, vector<128x256xbf16>
    %cst = arith.constant dense<0.000000e+00> : vector<8x256xf32>
    %3 = tpu.matmul %1, %2, %cst {dimension_numbers = #tpu.dot_dimension_numbers<[1], [0], [0], [1], [0, 0, 1, 1], [], []>} : vector<8x128xbf16>, vector<128x256xbf16>, vector<8x256xf32> -> vector<8x256xf32>
    %cst_3 = arith.constant dense<0.000000e+00> : vector<256xf32>
    %4 = vector.multi_reduction <add>, %3, %cst_3 [0] : vector<8x256xf32> to vector<256xf32>
    %5 = vector.shape_cast %4 : vector<256xf32> to vector<1x256xf32>
    %cst_4 = arith.constant 8.000000e+00 : f32
    %6 = vector.broadcast %cst_4 : f32 to vector<1x256xf32>
    %7 = arith.divf %5, %6 : vector<1x256xf32>
    %8 = vector.broadcast %7 : vector<1x256xf32> to vector<8x256xf32>
    %9 = arith.subf %3, %8 : vector<8x256xf32>
    %10 = arith.mulf %9, %9 : vector<8x256xf32>
    %cst_5 = arith.constant dense<0.000000e+00> : vector<256xf32>
    %11 = vector.multi_reduction <add>, %10, %cst_5 [0] : vector<8x256xf32> to vector<256xf32>
    %12 = vector.shape_cast %11 : vector<256xf32> to vector<1x256xf32>
    %cst_6 = arith.constant 8.000000e+00 : f32
    %13 = vector.broadcast %cst_6 : f32 to vector<1x256xf32>
    %14 = arith.divf %12, %13 : vector<1x256xf32>
    %cst_7 = arith.constant 9.99999974E-6 : f32
    %15 = vector.broadcast %cst_7 : f32 to vector<1x256xf32>
    %16 = arith.addf %14, %15 : vector<1x256xf32>
    %17 = math.rsqrt %16 : vector<1x256xf32>
    %18 = vector.broadcast %17 : vector<1x256xf32> to vector<8x256xf32>
    %19 = arith.mulf %9, %18 : vector<8x256xf32>
    %c0_8 = arith.constant 0 : index
    %c0_9 = arith.constant 0 : index
    %20 = vector.load %arg3[%c0_8, %c0_9] : memref<1x256xf32, #tpu.memory_space<vmem>>, vector<1x256xf32>
    %21 = vector.broadcast %20 : vector<1x256xf32> to vector<8x256xf32>
    %22 = arith.mulf %19, %21 : vector<8x256xf32>
    %c0_10 = arith.constant 0 : index
    %c0_11 = arith.constant 0 : index
    %23 = vector.load %arg4[%c0_10, %c0_11] : memref<1x256xf32, #tpu.memory_space<vmem>>, vector<1x256xf32>
    %24 = vector.broadcast %23 : vector<1x256xf32> to vector<8x256xf32>
    %25 = arith.addf %22, %24 : vector<8x256xf32>
    %c0_12 = arith.constant 0 : index
    %26 = memref.load %arg0[%c0_12] : memref<3xf32, #tpu.memory_space<smem>>
    %cst_13 = arith.constant 0.000000e+00 : f32
    %27 = vector.broadcast %cst_13 : f32 to vector<8x256xf32>
    %28 = arith.cmpf ogt, %25, %27 : vector<8x256xf32>
    %29 = vector.broadcast %26 : f32 to vector<8x256xf32>
    %30 = arith.mulf %29, %25 : vector<8x256xf32>
    %31 = arith.select %28, %25, %30 : vector<8x256xi1>, vector<8x256xf32>
    %32 = arith.truncf %31 : vector<8x256xf32> to vector<8x256xbf16>
    %c0_14 = arith.constant 0 : index
    %c0_15 = arith.constant 0 : index
    %33 = vector.load %arg5[%c0_14, %c0_15] : memref<256x128xbf16, #tpu.memory_space<vmem>>, vector<256x128xbf16>
    %cst_16 = arith.constant dense<0.000000e+00> : vector<8x128xf32>
    %34 = tpu.matmul %32, %33, %cst_16 {dimension_numbers = #tpu.dot_dimension_numbers<[1], [0], [0], [1], [0, 0, 1, 1], [], []>} : vector<8x256xbf16>, vector<256x128xbf16>, vector<8x128xf32> -> vector<8x128xf32>
    %cst_17 = arith.constant dense<0.000000e+00> : vector<128xf32>
    %35 = vector.multi_reduction <add>, %34, %cst_17 [0] : vector<8x128xf32> to vector<128xf32>
    %36 = vector.shape_cast %35 : vector<128xf32> to vector<1x128xf32>
    %cst_18 = arith.constant 8.000000e+00 : f32
    %37 = vector.broadcast %cst_18 : f32 to vector<1x128xf32>
    %38 = arith.divf %36, %37 : vector<1x128xf32>
    %39 = vector.broadcast %38 : vector<1x128xf32> to vector<8x128xf32>
    %40 = arith.subf %34, %39 : vector<8x128xf32>
    %41 = arith.mulf %40, %40 : vector<8x128xf32>
    %cst_19 = arith.constant dense<0.000000e+00> : vector<128xf32>
    %42 = vector.multi_reduction <add>, %41, %cst_19 [0] : vector<8x128xf32> to vector<128xf32>
    %43 = vector.shape_cast %42 : vector<128xf32> to vector<1x128xf32>
    %cst_20 = arith.constant 8.000000e+00 : f32
    %44 = vector.broadcast %cst_20 : f32 to vector<1x128xf32>
    %45 = arith.divf %43, %44 : vector<1x128xf32>
    %cst_21 = arith.constant 9.99999974E-6 : f32
    %46 = vector.broadcast %cst_21 : f32 to vector<1x128xf32>
    %47 = arith.addf %45, %46 : vector<1x128xf32>
    %48 = math.rsqrt %47 : vector<1x128xf32>
    %49 = vector.broadcast %48 : vector<1x128xf32> to vector<8x128xf32>
    %50 = arith.mulf %40, %49 : vector<8x128xf32>
    %c0_22 = arith.constant 0 : index
    %c0_23 = arith.constant 0 : index
    %51 = vector.load %arg6[%c0_22, %c0_23] : memref<1x128xf32, #tpu.memory_space<vmem>>, vector<1x128xf32>
    %52 = vector.broadcast %51 : vector<1x128xf32> to vector<8x128xf32>
    %53 = arith.mulf %50, %52 : vector<8x128xf32>
    %c0_24 = arith.constant 0 : index
    %c0_25 = arith.constant 0 : index
    %54 = vector.load %arg7[%c0_24, %c0_25] : memref<1x128xf32, #tpu.memory_space<vmem>>, vector<1x128xf32>
    %55 = vector.broadcast %54 : vector<1x128xf32> to vector<8x128xf32>
    %56 = arith.addf %53, %55 : vector<8x128xf32>
    %c1 = arith.constant 1 : index
    %57 = memref.load %arg0[%c1] : memref<3xf32, #tpu.memory_space<smem>>
    %cst_26 = arith.constant 0.000000e+00 : f32
    %58 = vector.broadcast %cst_26 : f32 to vector<8x128xf32>
    %59 = arith.cmpf ogt, %56, %58 : vector<8x128xf32>
    %60 = vector.broadcast %57 : f32 to vector<8x128xf32>
    %61 = arith.mulf %60, %56 : vector<8x128xf32>
    %62 = arith.select %59, %56, %61 : vector<8x128xi1>, vector<8x128xf32>
    %63 = arith.truncf %62 : vector<8x128xf32> to vector<8x128xbf16>
    %c0_27 = arith.constant 0 : index
    %c0_28 = arith.constant 0 : index
    %64 = vector.load %arg8[%c0_27, %c0_28] : memref<128x128xbf16, #tpu.memory_space<vmem>>, vector<128x128xbf16>
    %cst_29 = arith.constant dense<0.000000e+00> : vector<8x128xf32>
    %65 = tpu.matmul %63, %64, %cst_29 {dimension_numbers = #tpu.dot_dimension_numbers<[1], [0], [0], [1], [0, 0, 1, 1], [], []>} : vector<8x128xbf16>, vector<128x128xbf16>, vector<8x128xf32> -> vector<8x128xf32>
    %cst_30 = arith.constant dense<0.000000e+00> : vector<128xf32>
    %66 = vector.multi_reduction <add>, %65, %cst_30 [0] : vector<8x128xf32> to vector<128xf32>
    %67 = vector.shape_cast %66 : vector<128xf32> to vector<1x128xf32>
    %cst_31 = arith.constant 8.000000e+00 : f32
    %68 = vector.broadcast %cst_31 : f32 to vector<1x128xf32>
    %69 = arith.divf %67, %68 : vector<1x128xf32>
    %70 = vector.broadcast %69 : vector<1x128xf32> to vector<8x128xf32>
    %71 = arith.subf %65, %70 : vector<8x128xf32>
    %72 = arith.mulf %71, %71 : vector<8x128xf32>
    %cst_32 = arith.constant dense<0.000000e+00> : vector<128xf32>
    %73 = vector.multi_reduction <add>, %72, %cst_32 [0] : vector<8x128xf32> to vector<128xf32>
    %74 = vector.shape_cast %73 : vector<128xf32> to vector<1x128xf32>
    %cst_33 = arith.constant 8.000000e+00 : f32
    %75 = vector.broadcast %cst_33 : f32 to vector<1x128xf32>
    %76 = arith.divf %74, %75 : vector<1x128xf32>
    %cst_34 = arith.constant 9.99999974E-6 : f32
    %77 = vector.broadcast %cst_34 : f32 to vector<1x128xf32>
    %78 = arith.addf %76, %77 : vector<1x128xf32>
    %79 = math.rsqrt %78 : vector<1x128xf32>
    %80 = vector.broadcast %79 : vector<1x128xf32> to vector<8x128xf32>
    %81 = arith.mulf %71, %80 : vector<8x128xf32>
    %c0_35 = arith.constant 0 : index
    %c0_36 = arith.constant 0 : index
    %82 = vector.load %arg9[%c0_35, %c0_36] : memref<1x128xf32, #tpu.memory_space<vmem>>, vector<1x128xf32>
    %83 = vector.broadcast %82 : vector<1x128xf32> to vector<8x128xf32>
    %84 = arith.mulf %81, %83 : vector<8x128xf32>
    %c0_37 = arith.constant 0 : index
    %c0_38 = arith.constant 0 : index
    %85 = vector.load %arg10[%c0_37, %c0_38] : memref<1x128xf32, #tpu.memory_space<vmem>>, vector<1x128xf32>
    %86 = vector.broadcast %85 : vector<1x128xf32> to vector<8x128xf32>
    %87 = arith.addf %84, %86 : vector<8x128xf32>
    %c2 = arith.constant 2 : index
    %88 = memref.load %arg0[%c2] : memref<3xf32, #tpu.memory_space<smem>>
    %cst_39 = arith.constant 0.000000e+00 : f32
    %89 = vector.broadcast %cst_39 : f32 to vector<8x128xf32>
    %90 = arith.cmpf ogt, %87, %89 : vector<8x128xf32>
    %91 = vector.broadcast %88 : f32 to vector<8x128xf32>
    %92 = arith.mulf %91, %87 : vector<8x128xf32>
    %93 = arith.select %90, %87, %92 : vector<8x128xi1>, vector<8x128xf32>
    %c0_40 = arith.constant 0 : index
    %c0_41 = arith.constant 0 : index
    %94 = vector.load %arg11[%c0_40, %c0_41] : memref<8x128xf32, #tpu.memory_space<vmem>>, vector<8x128xf32>
    tpu.vector_store %arg11[%c0_40, %c0_41], %93 {strides = array<i32>} : memref<8x128xf32, #tpu.memory_space<vmem>>, vector<8x128xf32>,
    return
  }
}

</mosaic_0001>

<bundles_post_ra>
// kernel: mlp_forward.1
= control target key start
LH: loop header
LB: loop body
LE: loop exit
PB: predicated region body
PF: predicated region fallthrough
CT: control target
= control target key end

     0   :  { %16 = vsyncpa [#allocation5], 0  ;;  %s1060_s0 = inlined_call_operand.vmem [shape: f32[3], index: 0, kind: input, shape index: {}]   ;;  %s1061_s1 = inlined_call_operand.vmem [shape: f32[8,128], index: 1, kind: input, shape index: {}]   ;;  %s1062_s2 = inlined_call_operand.hbm [shape: bf16[128,256], index: 2, kind: input, shape index: {}]   ;;  %s1063_s3 = inlined_call_operand.vmem [shape: f32[1,256], index: 3, kind: input, shape index: {}]   ;;  %s1064_s4 = inlined_call_operand.vmem [shape: f32[1,256], index: 4, kind: input, shape index: {}]   ;;  %s1065_s5 = inlined_call_operand.hbm [shape: bf16[256,128], index: 5, kind: input, shape index: {}]   ;;  %s1066_s6 = inlined_call_operand.vmem [shape: f32[1,128], index: 6, kind: input, shape index: {}]   ;;  %s1067_s7 = inlined_call_operand.vmem [shape: f32[1,128], index: 7, kind: input, shape index: {}]   ;;  %s1068_s8 = inlined_call_operand.hbm [shape: bf16[128,128], index: 8, kind: input, shape index: {}]   ;;  %s1069_s9 = inlined_call_operand.vmem [shape: f32[1,128], index: 9, kind: input, shape index: {}]   ;;  %s1070_s10 = inlined_call_operand.vmem [shape: f32[1,128], index: 10, kind: input, shape index: {}]   ;;  %s1071_s11 = inlined_call_operand.hbm [shape: f32[8,128], index: 11, kind: output, shape index: {}]  }
   0x1   :  { %17 = vsyncpa [#allocation3], 0 }
   0x2   :  { %18 = vsyncpa [#allocation8], 0 }
   0x3   :  { %19 = vsyncpa [#allocation4], 0  ;;  %s946_s17 = smov [#allocation7]   ;;  %s26_s21 = sshll.u32 %s1060_s0, 4  ;;  %s27_s21 = int_to_ptr.vmem [resolvable:$true] %s26_s21 }
   0x4   :  { %s53_s18 = sshll.u32 %s946_s17, 4  ;;  %s54_s18 = int_to_ptr.vmem [resolvable:$true] %s53_s18 }
   0x5   :  { %s854_s22 = scalar_lea.vmem %s54_s18, 2048  ;;  %p859_p1 = scmp.lt.s32.totalorder %s54_s18, %s54_s18 }
   0x6   :  { %p855_p0 = scmp.ne.s32.totalorder %s54_s18, %s854_s22  ;;  %p860_p2 = scmp.lt.s32.totalorder %s854_s22, %s854_s22 }
   0x8   :  { %p861_p3 = por %p860_p2, %p859_p1 }
   0xa   :  { %p862_p4 = pnand %p861_p3, %p855_p0 }
   0xc   :  { %865 = shalt.err (!%p862_p4)
}
   0xd   :  { %s947_s23 = smov 64   ;;  %s948_s24 = smov 4  }
   0xe   :  { %59 = dma.hbm_to_vmem [thread:$0]  %s1065_s5, 2048, %s54_s18, [#allocation8], %s947_s23, %s947_s23, %s948_s24  }
   0xf   :  { %s866_s27 = scalar_lea.vmem %s27_s21, 16  ;;  %p871_p6 = scmp.lt.s32.totalorder %s27_s21, %s27_s21 }
  0x10   :  { %p867_p5 = scmp.ne.s32.totalorder %s27_s21, %s866_s27  ;;  %p872_p7 = scmp.lt.s32.totalorder %s866_s27, %s866_s27 }
  0x12   :  { %p873_p8 = por %p872_p7, %p871_p6 }
  0x14   :  { %p874_p9 = pnand %p873_p8, %p867_p5 }
  0x16   :  { %877 = shalt.err (!%p874_p9)
}
  0x17   :  { %s949_s0 = smov [#allocation2]   ;;  %s950_s28 = smov [#allocation6]  }
  0x18   :  { %29 = dma.vmem_to_smem %s27_s21, 16, %s949_s0, [#allocation5]  }
  0x19   :  { %s37_s29 = sshll.u32 %s950_s28, 4  ;;  %s38_s29 = int_to_ptr.vmem [resolvable:$true] %s37_s29 }
  0x1a   :  { %s886_s30 = scalar_lea.vmem %s38_s29, 2048  ;;  %p891_p11 = scmp.lt.s32.totalorder %s38_s29, %s38_s29 }
  0x1b   :  { %p887_p10 = scmp.ne.s32.totalorder %s38_s29, %s886_s30  ;;  %p892_p12 = scmp.lt.s32.totalorder %s886_s30, %s886_s30 }
  0x1d   :  { %p893_p13 = por %p892_p12, %p891_p11 }
  0x1f   :  { %p894_p0 = pnand %p893_p13, %p887_p10 }
  0x21   :  { %897 = shalt.err (!%p894_p0)
}
  0x22   :  { %s951_s5 = smov 128   ;;  %s952_s12 = smov 8  }
  0x23   :  { %43 = dma.hbm_to_vmem [thread:$0]  %s1062_s2, 2048, %s38_s29, [#allocation3], %s951_s5, %s951_s5, %s952_s12  }
  0x24   :  { %s953_s15 = smov [#allocation9]  }
  0x25   :  { %s69_s16 = sshll.u32 %s953_s15, 4  ;;  %s70_s16 = int_to_ptr.vmem [resolvable:$true] %s69_s16 }
  0x26   :  { %s906_s17 = scalar_lea.vmem %s70_s16, 1024  ;;  %p911_p2 = scmp.lt.s32.totalorder %s70_s16, %s70_s16 }
  0x27   :  { %p907_p1 = scmp.ne.s32.totalorder %s70_s16, %s906_s17  ;;  %p912_p3 = scmp.lt.s32.totalorder %s906_s17, %s906_s17 }
  0x29   :  { %p913_p4 = por %p912_p3, %p911_p2 }
  0x2b   :  { %p914_p5 = pnand %p913_p4, %p907_p1 }
  0x2d   :  { %917 = shalt.err (!%p914_p5)
}
  0x2e   :  { %75 = dma.hbm_to_vmem [thread:$0]  %s1068_s8, 1024, %s70_s16, [#allocation8], %s947_s23, %s947_s23, %s948_s24  }
  0x2f   :  { %938 = dma.done.wait [#allocation5], 16  }
  0x30   :  { %939 = vsyncadd [#allocation5], 4294967280 }
  0x31   :  { %940 = dma.done.wait [#allocation3], 2048  }
  0x32   :  { %941 = vsyncadd [#allocation3], 4294965248 }
  0x33   :  { %942 = dma.done.wait [#allocation8], 3072  }
  0x34   :  { %943 = vsyncadd [#allocation8], 4294964224 }
  0x35   :  { %92 = sfence }
  0x36   :  { %v790_v0 = vld [vmem:[#allocation6 + $0x74] ss:$8 sps:$4 sm:$0xff]   ;;  %v792_v1 = vld [vmem:[#allocation6 + $0x70] ss:$8 sps:$4 sm:$0xff]   ;;  %v954_v2 = vmov 0   ;;  %v94_v17 = vld [vmem:[%s1061_s1] sm:$0xff] }
  0x37   :  { %224 = vmatprep.mubr.bf16.mxu0 %v954_v2  ;;  %192 = vmatprep.subr.bf16.mxu0 %v790_v0  ;;  %v793_v3 = vld [vmem:[#allocation6 + $0x64] ss:$8 sps:$4 sm:$0xff]   ;;  %v795_v4 = vld [vmem:[#allocation6 + $0x60] ss:$8 sps:$4 sm:$0xff]   ;;  %v796_v5 = vld [vmem:[#allocation6 + $0x54] ss:$8 sps:$4 sm:$0xff]   ;;  %v95_v18 = vpack.c.bf16 %v94_v17, %v94_v17 }
  0x38   :  { %193 = vmatpush1.bf16.msra.mxu0 %v792_v1  ;;  %v798_v6 = vld [vmem:[#allocation6 + $0x50] ss:$8 sps:$4 sm:$0xff]   ;;  %v799_v7 = vld [vmem:[#allocation6 + $0x44] ss:$8 sps:$4 sm:$0xff]   ;;  %v801_v8 = vld [vmem:[#allocation6 + $0x40] ss:$8 sps:$4 sm:$0xff]  }
  0x39   :  { %194 = vmatprep.subr.bf16.mxu0 %v793_v3  ;;  %v802_v9 = vld [vmem:[#allocation6 + $0x34] ss:$8 sps:$4 sm:$0xff]   ;;  %v804_v10 = vld [vmem:[#allocation6 + $0x30] ss:$8 sps:$4 sm:$0xff]   ;;  %v805_v11 = vld [vmem:[#allocation6 + $0x24] ss:$8 sps:$4 sm:$0xff]  }
  0x3a   :  { %v807_v12 = vld [vmem:[#allocation6 + $0x20] ss:$8 sps:$4 sm:$0xff]   ;;  %v808_v13 = vld [vmem:[#allocation6 + $0x14] ss:$8 sps:$4 sm:$0xff]   ;;  %v810_v14 = vld [vmem:[#allocation6 + $0x10] ss:$8 sps:$4 sm:$0xff]  }
  0x3b   :  { %v811_v15 = vld [vmem:[#allocation6 + $0x4] ss:$8 sps:$4 sm:$0xff]   ;;  %v813_v16 = vld [vmem:[#allocation6] ss:$8 sps:$4 sm:$0xff]   ;;  %v814_v19 = vld [vmem:[#allocation7 + $0x78] sm:$0xff]   ;;  %s300_s21 = sld [smem:[#allocation2]] }
  0x3c   :  { %195 = vmatpush1.bf16.msra.mxu0 %v795_v4  ;;  %v815_v20 = vld [vmem:[#allocation7 + $0x38] sm:$0xff]   ;;  %727 = vmatprep.subr.bf16.mxu1 %v814_v19  ;;  %v816_v21 = vld [vmem:[#allocation7 + $0x70] sm:$0xff]   ;;  %v818_v23 = vld [vmem:[#allocation7 + $0x68] sm:$0xff]   ;;  %vm956_vm2 = vmmov 0   ;;  %s957_s29 = smov [#allocation10]  }
  0x3d   :  { %196 = vmatprep.subr.bf16.mxu0 %v796_v5  ;;  %728 = vmatpush3.bf16.msra.mxu1 %v815_v20  ;;  %v817_v22 = vld [vmem:[#allocation7 + $0x30] sm:$0xff]   ;;  %v819_v24 = vld [vmem:[#allocation7 + $0x28] sm:$0xff]   ;;  %v820_v25 = vld [vmem:[#allocation7 + $0x60] sm:$0xff]   ;;  %s670_s30 = sshll.u32 %s957_s29, 4  ;;  %s671_s30 = int_to_ptr.vmem [resolvable:$true] %s670_s30 }
  0x3e   :  { %729 = vmatprep.subr.bf16.mxu1 %v816_v21  ;;  %v821_v26 = vld [vmem:[#allocation7 + $0x20] sm:$0xff]   ;;  %v822_v27 = vld [vmem:[#allocation7 + $0x58] sm:$0xff]   ;;  %v824_v29 = vld [vmem:[#allocation7 + $0x50] sm:$0xff]   ;;  %s918_s5 = scalar_lea.vmem %s671_s30, 128  ;;  %p923_p7 = scmp.lt.s32.totalorder %s671_s30, %s671_s30 }
  0x3f   :  { %v823_v28 = vld [vmem:[#allocation7 + $0x18] sm:$0xff]   ;;  %v825_v30 = vld [vmem:[#allocation7 + $0x10] sm:$0xff]   ;;  %v826_v31 = vld [vmem:[#allocation7 + $0x48] sm:$0xff]   ;;  %p919_p6 = scmp.ne.s32.totalorder %s671_s30, %s918_s5  ;;  %p924_p8 = scmp.lt.s32.totalorder %s918_s5, %s918_s5 }
  0x40   :  { %197 = vmatpush1.bf16.msra.mxu0 %v798_v6  ;;  %v827_v32 = vld [vmem:[#allocation7 + $0x8] sm:$0xff]   ;;  %v828_v33 = vld [vmem:[#allocation7 + $0x40] sm:$0xff]  }
  0x41   :  { %198 = vmatprep.subr.bf16.mxu0 %v799_v7  ;;  %730 = vmatpush3.bf16.msra.mxu1 %v817_v22  ;;  %v829_v34 = vld [vmem:[#allocation7] sm:$0xff]   ;;  %p925_p9 = por %p924_p8, %p923_p7 }
  0x42   :  { %731 = vmatprep.subr.bf16.mxu1 %v818_v23 }
  0x43   :  { %p926_p10 = pnand %p925_p9, %p919_p6 }
  0x44   :  { %199 = vmatpush1.bf16.msra.mxu0 %v801_v8  ;;  %v274_v8 = vlaneseq }
  0x45   :  { %200 = vmatprep.subr.bf16.mxu0 %v802_v9  ;;  %732 = vmatpush3.bf16.msra.mxu1 %v819_v24  ;;  %v303_v24 = vstv %s300_s21 }
  0x46   :  { %733 = vmatprep.subr.bf16.mxu1 %v820_v25 }
  0x48   :  { %201 = vmatpush1.bf16.msra.mxu0 %v804_v10  ;;  %v275_v10 = vshrl.u32 %v274_v8, 7 }
  0x49   :  { %202 = vmatprep.subr.bf16.mxu0 %v805_v11  ;;  %734 = vmatpush3.bf16.msra.mxu1 %v821_v26 }
  0x4a   :  { %735 = vmatprep.subr.bf16.mxu1 %v822_v27  ;;  %v276_v11 = vsub.s32 0, %v275_v10 }
  0x4c   :  { %203 = vmatpush1.bf16.msra.mxu0 %v807_v12  ;;  %v272_v12 = vld [vmem:[%s1063_s3] sm:$0x3]  ;;  %s715_s3 = sld [smem:[#allocation2 + $0x1]] }
  0x4d   :  { %204 = vmatprep.subr.bf16.mxu0 %v808_v13  ;;  %736 = vmatpush3.bf16.msra.mxu1 %v823_v28  ;;  %v280_v13 = vsub.s32 1, %v275_v10 }
  0x4e   :  { %737 = vmatprep.subr.bf16.mxu1 %v824_v29 }
  0x50   :  { %205 = vmatpush1.bf16.msra.mxu0 %v810_v14  ;;  %v286_v14 = vld [vmem:[%s1064_s4] sm:$0x3] }
  0x51   :  { %206 = vmatprep.subr.bf16.mxu0 %v811_v15  ;;  %738 = vmatpush3.bf16.msra.mxu1 %v825_v30  ;;  %v277_v15 = vrot.slane %v272_v12, %v276_v11  ;;  %v291_v19 = vrot.slane %v286_v14, %v276_v11  ;;  %v295_v23 = vrot.slane %v286_v14, %v280_v13 }
  0x52   :  { %739 = vmatprep.subr.bf16.mxu1 %v826_v31 }
  0x54   :  { %207 = vmatpush1.bf16.msra.mxu0 %v813_v16 }
  0x55   :  { %740 = vmatpush3.bf16.msra.mxu1 %v827_v32 }
  0x56   :  { %741 = vmatprep.subr.bf16.mxu1 %v828_v33 }
  0x57   :  { %225 = vmatmul.mubr.bf16.vlgmr.msra.gmra.mxu0 %v95_v18  ;;  %v281_v18 = vrot.slane %v272_v12, %v280_v13 }
  0x59   :  { %742 = vmatpush3.bf16.msra.mxu1 %v829_v34  ;;  %v830_v34 = vld [vmem:[#allocation9 + $0x38] sm:$0xff]  }
 0x117   :  { %v226_v35 = vpop.f32.mrf.mxu0 }
 0x118   :  { %v233_v36 = vrot.slane %v226_v35, 4 }
 0x119   :  { %v228_v37 = vpop.f32.mrf.mxu0 }
 0x11a   :  { %v234_v38 = vadd.f32 %v233_v36, %v226_v35  ;;  %v239_v39 = vrot.slane %v228_v37, 4  ;;  %v831_v36 = vld [vmem:[#allocation9 + $0x30] sm:$0xff]  }
 0x11b   :  { %v230_v40 = vpop.f32.mrf.mxu0 }
 0x11c   :  { %v235_v41 = vrot.slane %v234_v38, 2  ;;  %v240_v42 = vadd.f32 %v239_v39, %v228_v37  ;;  %v834_v39 = vld [vmem:[#allocation9 + $0x18] sm:$0xff]   ;;  %v835_v40 = vld [vmem:[#allocation9 + $0x10] sm:$0xff]  }
 0x11d   :  { %v231_v43 = vpop.f32.mrf.mxu0 }
 0x11e   :  { %v236_v44 = vadd.f32 %v235_v41, %v234_v38  ;;  %v241_v45 = vrot.slane %v240_v42, 2  ;;  %v833_v38 = vld [vmem:[#allocation9 + $0x20] sm:$0xff]   ;;  %v836_v41 = vld [vmem:[#allocation9 + $0x8] sm:$0xff]  }
 0x120   :  { %v237_v46 = vrot.slane %v236_v44, 1  ;;  %v242_v47 = vadd.f32 %v241_v45, %v240_v42  ;;  %v837_v42 = vld [vmem:[#allocation9] sm:$0xff]  }
 0x122   :  { %v238_v48 = vadd.f32 %v237_v46, %v236_v44  ;;  %v243_v49 = vrot.slane %v242_v47, 1 }
 0x124   :  { %v246_v50 = vmul.f32 0.125, %v238_v48  ;;  %v244_v51 = vadd.f32 %v243_v49, %v242_v47 }
 0x126   :  { %v248_v52 = vsub.f32 %v226_v35, %v246_v50  ;;  %v247_v53 = vmul.f32 0.125, %v244_v51  ;;  %v955_v35 = vmov 0.0  }
 0x127   :  { %758 = vmatprep.subr.bf16.mxu0 %v955_v35  ;;  %774 = vmatprep.mubr.msk.bf16.mxu0 %vm956_vm2, %v955_v35 }
 0x128   :  { %v250_v54 = vmul.f32 %v248_v52, %v248_v52  ;;  %v249_v55 = vsub.f32 %v228_v37, %v247_v53  ;;  %759 = vmatpush3.bf16.msra.mxu0 %v830_v34  ;;  %v832_v37 = vld [vmem:[#allocation9 + $0x28] sm:$0xff]  }
 0x129   :  { %760 = vmatprep.subr.bf16.mxu0 %v955_v35 }
 0x12a   :  { %v252_v56 = vrot.slane %v250_v54, 4  ;;  %v251_v57 = vmul.f32 %v249_v55, %v249_v55 }
 0x12c   :  { %v253_v58 = vadd.f32 %v252_v56, %v250_v54  ;;  %v258_v59 = vrot.slane %v251_v57, 4  ;;  %761 = vmatpush3.bf16.msra.mxu0 %v831_v36 }
 0x12d   :  { %762 = vmatprep.subr.bf16.mxu0 %v955_v35 }
 0x12e   :  { %v254_v60 = vrot.slane %v253_v58, 2  ;;  %v259_v61 = vadd.f32 %v258_v59, %v251_v57 }
 0x130   :  { %v255_v62 = vadd.f32 %v254_v60, %v253_v58  ;;  %v260_v63 = vrot.slane %v259_v61, 2  ;;  %763 = vmatpush3.bf16.msra.mxu0 %v832_v37 }
 0x131   :  { %764 = vmatprep.subr.bf16.mxu0 %v955_v35 }
 0x132   :  { %v256_v0 = vrot.slane %v255_v62, 1  ;;  %v261_v1 = vadd.f32 %v260_v63, %v259_v61 }
 0x134   :  { %v257_v2 = vadd.f32 %v256_v0, %v255_v62  ;;  %v262_v3 = vrot.slane %v261_v1, 1  ;;  %765 = vmatpush3.bf16.msra.mxu0 %v833_v38 }
 0x135   :  { %766 = vmatprep.subr.bf16.mxu0 %v955_v35 }
 0x136   :  { %v264_v4 = vmul.f32 0.125, %v257_v2  ;;  %v263_v5 = vadd.f32 %v262_v3, %v261_v1  ;;  %v713_v2 = vld [vmem:[%s1066_s6] ss:$0 sm:$0xff]  ;;  %s726_s6 = sld [smem:[#allocation2 + $0x2]] }
 0x138   :  { %v266_v6 = vadd.f32 1e-05, %v264_v4  ;;  %v265_v7 = vmul.f32 0.125, %v263_v5  ;;  %767 = vmatpush3.bf16.msra.mxu0 %v834_v39  ;;  %v714_v4 = vld [vmem:[%s1067_s7] ss:$0 sm:$0xff] }
 0x139   :  { %768 = vmatprep.subr.bf16.mxu0 %v955_v35 }
 0x13a   :  { %838 = vrsqrt.f32 %v266_v6  ;;  %v267_v9 = vadd.f32 1e-05, %v265_v7  ;;  %v515_v6 = vstv %s715_s3 }
 0x13c   :  { %840 = vrsqrt.f32 %v267_v9  ;;  %769 = vmatpush3.bf16.msra.mxu0 %v835_v40  ;;  %v660_v37 = vstv %s726_s6 }
 0x13d   :  { %770 = vmatprep.subr.bf16.mxu0 %v955_v35 }
 0x140   :  { %771 = vmatpush3.bf16.msra.mxu0 %v836_v41 }
 0x141   :  { %772 = vmatprep.subr.bf16.mxu0 %v955_v35  ;;  %v725_v35 = vld [vmem:[%s1070_s10] ss:$0 sm:$0xff] }
 0x144   :  { %773 = vmatpush3.bf16.msra.mxu0 %v837_v42 }
 0x147   :  { %v839_v16 = vpop.eup %838 }
 0x148   :  { %v270_v17 = vmul.f32 %v839_v16, %v248_v52 }
 0x149   :  { %v841_v20 = vpop.eup %840 }
 0x14a   :  { %v284_v21 = vmul.f32 %v277_v15, %v270_v17  ;;  %v271_v22 = vmul.f32 %v841_v20, %v249_v55 }
 0x14c   :  { %v285_v25 = vmul.f32 %v281_v18, %v271_v22  ;;  %v298_v26 = vadd.f32 %v291_v19, %v284_v21 }
 0x14e   :  { %v299_v27 = vadd.f32 %v295_v23, %v285_v25  ;;  %v304_v28 = vmul.f32 %v303_v24, %v298_v26  ;;  %vm301_vm0 = vcmp.gt.f32.partialorder %v298_v26, 0.0 }
 0x150   :  { %vm302_vm1 = vcmp.gt.f32.partialorder %v299_v27, 0.0  ;;  %v305_v29 = vmul.f32 %v303_v24, %v299_v27  ;;  %v306_v30 = vsel %vm301_vm0, %v298_v26, %v304_v28 }
 0x151   :  { %v308_v33 = vpack.c.bf16 %v306_v30, %v306_v30 }
 0x152   :  { %v307_v31 = vsel %vm302_vm1, %v299_v27, %v305_v29 }
 0x153   :  { %v309_v32 = vpack.c.bf16 %v307_v31, %v307_v31 }
 0x155   :  { %470 = vmatprep.mubr.bf16.mxu1 %v309_v32 }
 0x156   :  { %471 = vmatmul.mubr.bf16.vlgmr.msra.gmra.mxu1 %v308_v33  ;;  %v724_v33 = vld [vmem:[%s1069_s9] ss:$0 sm:$0xff] }
 0x216   :  { %v743_v43 = vpop.f32.mrf.mxu1 }
 0x218   :  { %v744_v44 = vpop.f32.mrf.mxu1 }
 0x219   :  { %v745_v45 = vadd.f32 %v744_v44, %v743_v43 }
 0x21a   :  { %v746_v46 = vpop.f32.mrf.mxu1 }
 0x21b   :  { %v478_v47 = vrot.slane %v745_v45, 4 }
 0x21c   :  { %v747_v48 = vpop.f32.mrf.mxu1 }
 0x21d   :  { %v479_v49 = vadd.f32 %v745_v45, %v478_v47 }
 0x21f   :  { %v480_v50 = vrot.slane %v479_v49, 2 }
 0x221   :  { %v481_v51 = vadd.f32 %v480_v50, %v479_v49 }
 0x223   :  { %v482_v52 = vrot.slane %v481_v51, 1 }
 0x225   :  { %v483_v53 = vadd.f32 %v482_v52, %v481_v51 }
 0x227   :  { %v484_v54 = vmul.f32 0.125, %v483_v53 }
 0x229   :  { %v485_v55 = vsub.f32 %v745_v45, %v484_v54 }
 0x22b   :  { %v486_v56 = vmul.f32 %v485_v55, %v485_v55 }
 0x22d   :  { %v487_v57 = vrot.slane %v486_v56, 4 }
 0x22f   :  { %v488_v58 = vadd.f32 %v487_v57, %v486_v56 }
 0x231   :  { %v489_v59 = vrot.slane %v488_v58, 2 }
 0x233   :  { %v490_v60 = vadd.f32 %v489_v59, %v488_v58 }
 0x235   :  { %v491_v61 = vrot.slane %v490_v60, 1 }
 0x237   :  { %v492_v62 = vadd.f32 %v491_v61, %v490_v60 }
 0x239   :  { %v493_v63 = vmul.f32 0.125, %v492_v62 }
 0x23b   :  { %v494_v0 = vadd.f32 1e-05, %v493_v63 }
 0x23d   :  { %842 = vrsqrt.f32 %v494_v0 }
 0x24a   :  { %v843_v1 = vpop.eup %842 }
 0x24b   :  { %v496_v3 = vmul.f32 %v843_v1, %v485_v55 }
 0x24d   :  { %v504_v5 = vmul.f32 %v713_v2, %v496_v3 }
 0x24f   :  { %v512_v7 = vadd.f32 %v714_v4, %v504_v5 }
 0x251   :  { %vm514_vm3 = vcmp.gt.f32.partialorder %v512_v7, 0.0  ;;  %v516_v8 = vmul.f32 %v515_v6, %v512_v7 }
 0x253   :  { %v517_v9 = vsel %vm514_vm3, %v512_v7, %v516_v8 }
 0x254   :  { %v518_v10 = vpack.c.bf16 %v517_v9, %v517_v9 }
 0x256   :  { %775 = vmatmul.mubr.bf16.vlgmr.msra.gmra.mxu0 %v518_v10 }
 0x316   :  { %v617_v11 = vpop.f32.mrf.mxu0 }
 0x317   :  { %v623_v12 = vrot.slane %v617_v11, 4 }
 0x318   :  { %v776_v13 = vpop.f32.mrf.mxu0 }
 0x319   :  { %v624_v14 = vadd.f32 %v623_v12, %v617_v11 }
 0x31a   :  { %v620_v15 = vpop.f32.mrf.mxu0 }
 0x31b   :  { %v625_v16 = vrot.slane %v624_v14, 2 }
 0x31c   :  { %v777_v17 = vpop.f32.mrf.mxu0 }
 0x31d   :  { %v626_v18 = vadd.f32 %v625_v16, %v624_v14 }
 0x31f   :  { %v627_v19 = vrot.slane %v626_v18, 1 }
 0x321   :  { %v628_v20 = vadd.f32 %v627_v19, %v626_v18 }
 0x323   :  { %v629_v21 = vmul.f32 0.125, %v628_v20 }
 0x325   :  { %v630_v22 = vsub.f32 %v617_v11, %v629_v21 }
 0x327   :  { %v631_v23 = vmul.f32 %v630_v22, %v630_v22 }
 0x329   :  { %v632_v24 = vrot.slane %v631_v23, 4 }
 0x32b   :  { %v633_v25 = vadd.f32 %v632_v24, %v631_v23 }
 0x32d   :  { %v634_v26 = vrot.slane %v633_v25, 2 }
 0x32f   :  { %v635_v27 = vadd.f32 %v634_v26, %v633_v25 }
 0x331   :  { %v636_v28 = vrot.slane %v635_v27, 1 }
 0x333   :  { %v637_v29 = vadd.f32 %v636_v28, %v635_v27 }
 0x335   :  { %v638_v30 = vmul.f32 0.125, %v637_v29 }
 0x337   :  { %v639_v31 = vadd.f32 1e-05, %v638_v30 }
 0x339   :  { %844 = vrsqrt.f32 %v639_v31 }
 0x346   :  { %v845_v32 = vpop.eup %844 }
 0x347   :  { %v641_v34 = vmul.f32 %v845_v32, %v630_v22 }
 0x349   :  { %v649_v36 = vmul.f32 %v724_v33, %v641_v34 }
 0x34b   :  { %v657_v38 = vadd.f32 %v725_v35, %v649_v36 }
 0x34d   :  { %vm659_vm4 = vcmp.gt.f32.partialorder %v657_v38, 0.0  ;;  %v661_v39 = vmul.f32 %v660_v37, %v657_v38 }
 0x34f   :  { %v662_v40 = vsel %vm659_vm4, %v657_v38, %v661_v39 }
 0x350   :  { %663 = vst [vmem:[#allocation10] sm:$0xff] %v662_v40 }
 0x351   :  { %929 = shalt.err (!%p926_p10)
}
 0x352   :  { %673 = dma.vmem_to_hbm [thread:$0]  %s671_s30, 128, %s1071_s11, [#allocation4]  }
 0x353   :  { %944 = dma.done.wait [#allocation4], 128  }
 0x354   :  { %945 = vsyncadd [#allocation4], 4294967168 }
 0x355   :  { %677 = vsyncpa [#allocation3], 1 }
 0x356   :  { %678 = vsyncpa [#allocation8], 1 }
 0x357   :  { %679 = vsyncpa [#allocation4], 1 }
 0x358   :  { %680 = vsyncpa [#allocation5], 1 }

</bundles_post_ra>
